<compile_context>
chip_gen: v6e
topology: v6e:2x2x1
jax: 0.10.0
libtpu: 0.0.40
codegen_flags: <defaults>
</compile_context>

<pallas_src>
from typing import Any, NamedTuple

import jax
import jax.numpy as jnp
from jax import lax
from jax.experimental import pallas as pl
from jax.experimental.pallas import tpu as pltpu


def _round_up(x: int, m: int) -> int:
    return ((x + m - 1) // m) * m


def _vmem_capacity_bytes(default: int = 64 << 20) -> int:
    """Physical VMEM per core; conservative 64 MiB fallback (v7x-safe)."""
    try:
        info = pltpu.get_tpu_info()
        cap = int(getattr(info, "vmem_capacity_bytes", 0) or 0)
        if cap > 0:
            return cap
    except Exception:
        pass
    return default


# ----------------------------------------------------------------------------
# Kernel
# ----------------------------------------------------------------------------
def lwnn_kernel(x_ref, w_ref, b_ref, o_ref, acc_ref):
    """One (tm, tn) output tile of relu(x @ W.T + b); grid axis 2 is the K reduction."""
    k = pl.program_id(2)

    @pl.when(k == 0)
    def _init():
        acc_ref[...] = jnp.zeros_like(acc_ref)

    # Weight tile is (tn, tk) in its NATIVE [N, K] layout: contract K against K
    # (an "NT" matmul) so no transposed weight copy is needed. fp32 accumulation.
    acc_ref[...] += lax.dot_general(
        x_ref[...], w_ref[...],
        dimension_numbers=(((1,), (1,)), ((), ())),
        preferred_element_type=jnp.float32)

    # Finalize once per output tile: fp32 bias add + ReLU + single lane-dense store.
    @pl.when(k == pl.num_programs(2) - 1)
    def _finalize():
        y = acc_ref[...] + b_ref[...]          # (1, tn) broadcasts over (tm, tn)
        o_ref[...] = jnp.maximum(y, 0.0).astype(o_ref.dtype)


# ----------------------------------------------------------------------------
# One-time parameter preparation (off the hot path)
# ----------------------------------------------------------------------------
class LWNNParams(NamedTuple):
    w: jax.Array          # [Np, Kp], native (out_features, in_features) layout, compute dtype
    b: jax.Array          # [1, Np], float32
    N: int
    K: int
    Np: int
    Kp: int
    compute_dtype: Any


def prepare_lwnn_params(weight, bias, *, compute_dtype=jnp.float32) -> LWNNParams:
    """Init-time weight/bias prep: pad to lane alignment + cast, keeping the
    native [N, K] layout.  Doing this once (weights are static) removes 1-2
    full HBM passes over W from every forward call.

    compute_dtype=jnp.bfloat16 is recommended on all TPU generations
    (v5e/v6e/v7x — v5e's MXU is bf16-native); accumulation stays fp32.
    """
    compute_dtype = jnp.dtype(compute_dtype)
    N, K = weight.shape
    assert bias.shape == (N,)
    Np = _round_up(N, 128)
    Kp = _round_up(K, 128)
    w = weight
    if (Np, Kp) != (N, K):
        w = jnp.pad(w, ((0, Np - N), (0, Kp - K)))
    w = w.astype(compute_dtype)
    b = jnp.pad(bias.astype(jnp.float32), (0, Np - N)).reshape(1, Np)
    return LWNNParams(w=w, b=b, N=N, K=K, Np=Np, Kp=Kp, compute_dtype=compute_dtype)


# ----------------------------------------------------------------------------
# Tile-plan selection (cost-model search, VMEM-budget aware)
# ----------------------------------------------------------------------------
def _divisor_tiles(total: int, align: int, cap: int):
    """Multiples of `align` that divide `total`, descending, capped."""
    return sorted((d for d in range(align, min(total, cap) + 1, align)
                   if total % d == 0), reverse=True)


def _footprint_bytes(tm, tn, tk, csize, osize):
    return (2 * tm * tk * csize        # x tiles (double buffered)
            + 2 * tn * tk * csize      # weight tiles (double buffered)
            + 2 * 8 * tn * 4           # bias tiles (sublane-padded)
            + 2 * tm * tn * osize      # output tiles (double buffered)
            + tm * tn * 4)             # fp32 accumulator scratch


def _vmem_needed(tm, tn, tk, csize, osize):
    fp = _footprint_bytes(tm, tn, tk, csize, osize)
    return fp + fp // 4 + (4 << 20)    # 25% + 4 MiB headroom for compiler scratch


def _plan_cost(tm, tn, tk, mp, np_, kp, csize, osize):
    gm, gn, gk = mp // tm, np_ // tn, kp // tk
    x_bytes = gn * mp * kp * csize          # x re-streamed once per N block
    w_bytes = gm * np_ * kp * csize         # W re-streamed once per M block
    o_bytes = mp * np_ * osize
    mxu = 2.0 * mp * np_ * kp / 600.0       # MXU work in ~HBM-byte equivalents
    steps = gm * gn * gk * 5.0e5            # ~0.35us/grid step @ ~1.4 TB/s
    return x_bytes + w_bytes + o_bytes + mxu + steps


def _choose_plan(M, Np, Kp, csize, osize, row_align, vmem_budget):
    mp0 = _round_up(M, row_align)
    tm_cands = sorted({c for c in (1024, 512, 384, 256, 128, 64, 32, 16, 8)
                       if c % row_align == 0 and c <= mp0} | {min(mp0, 1024)},
                      reverse=True)
    tn_cands = _divisor_tiles(Np, 128, 2048)
    tk_cands = _divisor_tiles(Kp, 128, 4096)

    best = {}
    for tm in tm_cands:
        mp = _round_up(mp0, tm)
        gm = mp // tm
        for tn in tn_cands:
            gn = Np // tn
            for tk in tk_cands:
                if _vmem_needed(tm, tn, tk, csize, osize) > vmem_budget:
                    continue
                cost = _plan_cost(tm, tn, tk, mp, Np, Kp, csize, osize)
                plan = (tm, tn, tk, mp, cost)
                if "any" not in best or cost < best["any"][4]:
                    best["any"] = plan
                if gm * gn >= 2 and ("split" not in best or cost < best["split"][4]):
                    best["split"] = plan

    assert "any" in best, "no feasible tile plan under the VMEM budget"
    chosen = best["any"]
    # Prefer >= 2 parallel (i, j) blocks (keeps both v7x TensorCores busy) when
    # it costs no more than ~1.5x the unconstrained single-core work.
    if "split" in best and best["split"][4] <= 1.5 * best["any"][4]:
        chosen = best["split"]
    tm, tn, tk, mp, _ = chosen
    return tm, tn, tk, mp


# ----------------------------------------------------------------------------
# Hot-path apply
# ----------------------------------------------------------------------------
def lwnn_layer_apply(x, params: LWNNParams, *, out_dtype=None):
    """relu(x @ W.T + b) with pre-prepared parameters — the per-call hot path."""
    M, K = x.shape
    assert K == params.K, f"expected input_len={params.K}, got {K}"
    compute_dtype = jnp.dtype(params.compute_dtype)
    out_dtype = jnp.dtype(out_dtype) if out_dtype is not None else x.dtype
    csize = compute_dtype.itemsize
    osize = out_dtype.itemsize
    N, Np, Kp = params.N, params.Np, params.Kp

    # bf16 tiles want 16-row sublane alignment; fp32 wants 8.
    row_align = 16 if 2 in (csize, osize) else 8

    vmem_budget = int(_vmem_capacity_bytes() * 0.65)   # ~41 MiB v7x, ~83 MiB v5e/v6e
    tm, tn, tk, Mp = _choose_plan(M, Np, Kp, csize, osize, row_align, vmem_budget)

    # Hot-path x handling: cast / pad only when actually required.
    xp = x
    if xp.dtype != compute_dtype:
        xp = xp.astype(compute_dtype)
    if (Mp, Kp) != (M, K):
        xp = jnp.pad(xp, ((0, Mp - M), (0, Kp - K)))
    # TODO(synk): allow_input_fusion could fold this residual pad/cast into the
    # pallas_call when XLA supports it for this op mix.

    gm, gn, gk = Mp // tm, Np // tn, Kp // tk
    vmem_limit = int(min(vmem_budget,
                         max(_vmem_needed(tm, tn, tk, csize, osize), 16 << 20)))

    cost = pl.CostEstimate(
        flops=int(2 * Mp * Np * Kp),
        transcendentals=0,
        bytes_accessed=int(gn * Mp * Kp * csize      # x re-read per N block
                           + gm * Np * Kp * csize    # W re-read per M block
                           + Mp * Np * osize         # padded output writeback
                           + Np * 4),                # bias
    )

    out_p = pl.pallas_call(
        lwnn_kernel,
        out_shape=jax.ShapeDtypeStruct((Mp, Np), out_dtype),
        grid_spec=pltpu.PrefetchScalarGridSpec(
            num_scalar_prefetch=0,
            grid=(gm, gn, gk),
            in_specs=[
                pl.BlockSpec((tm, tk), lambda i, j, k: (i, k)),   # x tile
                pl.BlockSpec((tn, tk), lambda i, j, k: (j, k)),   # W tile, native [N, K]
                pl.BlockSpec((1, tn), lambda i, j, k: (0, j)),    # bias tile
            ],
            out_specs=pl.BlockSpec((tm, tn), lambda i, j, k: (i, j)),
            scratch_shapes=[pltpu.VMEM((tm, tn), jnp.float32)],
        ),
        compiler_params=pltpu.CompilerParams(
            dimension_semantics=("parallel", "parallel", "arbitrary"),
            vmem_limit_bytes=vmem_limit,
        ),
        cost_estimate=cost,
    )(xp, params.w, params.b)

    if (Mp, Np) != (M, N):
        out_p = out_p[:M, :N]
    return out_p


def lwnn_layer(x, weight, bias, *, compute_dtype=jnp.float32, out_dtype=None):
    """One-shot convenience wrapper.  Prefer prepare_lwnn_params() once +
    lwnn_layer_apply() per call so weight padding/casting stays off the hot path."""
    params = prepare_lwnn_params(weight, bias, compute_dtype=compute_dtype)
    return lwnn_layer_apply(x, params, out_dtype=out_dtype)


# ----------------------------------------------------------------------------
# Self-test
# ----------------------------------------------------------------------------
if __name__ == "__main__":
    key = jax.random.PRNGKey(0)
    k_x, k_w, k_b, k_x2, k_w2, k_b2, k_x3 = jax.random.split(key, 7)

    # Small shapes consistent with the module: batch=16, input_len=32, output_len=64.
    batch, input_len, output_len = 16, 32, 64
    x = jax.random.normal(k_x, (batch, input_len), dtype=jnp.float32)
    bound = 1.0 / (input_len ** 0.5)
    w = jax.random.uniform(k_w, (output_len, input_len), jnp.float32, -bound, bound)
    b = jax.random.uniform(k_b, (output_len,), jnp.float32, -bound, bound)
    ref = jnp.maximum(x @ w.T + b, 0.0)

    # fp32 path: prepare once, then hot-path apply (matches PyTorch fp32 semantics).
    params = prepare_lwnn_params(w, b, compute_dtype=jnp.float32)
    out = jax.block_until_ready(lwnn_layer_apply(x, params))
    assert out.shape == (batch, output_len)
    assert jnp.allclose(out, ref, atol=1e-5, rtol=1e-5), "fp32 mismatch vs reference"

    # Re-use the prepared params for another batch -> no weight prep on the hot path.
    x3 = jax.random.normal(k_x3, (24, input_len), dtype=jnp.float32)
    out3 = jax.block_until_ready(lwnn_layer_apply(x3, params))
    ref3 = jnp.maximum(x3 @ w.T + b, 0.0)
    assert jnp.allclose(out3, ref3, atol=1e-5, rtol=1e-5), "fp32 (reused params) mismatch"

    # bf16 streaming path (recommended on v5e/v6e/v7x); fp32 accumulation + epilogue.
    params_bf16 = prepare_lwnn_params(w, b, compute_dtype=jnp.bfloat16)
    out_bf16 = jax.block_until_ready(lwnn_layer_apply(x, params_bf16))
    ref_bf16 = jnp.maximum(
        x.astype(jnp.bfloat16).astype(jnp.float32)
        @ w.T.astype(jnp.bfloat16).astype(jnp.float32) + b, 0.0)
    assert out_bf16.dtype == jnp.float32
    assert jnp.allclose(out_bf16, ref_bf16, atol=2e-2, rtol=2e-2), "bf16 compute mismatch"

    # Optional bf16 output (halves writeback bytes for downstream bf16 consumers).
    out_bf16o = jax.block_until_ready(
        lwnn_layer_apply(x, params_bf16, out_dtype=jnp.bfloat16))
    assert out_bf16o.dtype == jnp.bfloat16
    assert jnp.allclose(out_bf16o.astype(jnp.float32), ref_bf16,
                        atol=4e-2, rtol=4e-2), "bf16 output mismatch"

    # Ragged (non-multiple) shapes exercise the padding / tile-plan search.
    M2, K2, N2 = 200, 136, 300
    x2 = jax.random.normal(k_x2, (M2, K2), dtype=jnp.float32)
    bound2 = 1.0 / (K2 ** 0.5)
    w2 = jax.random.uniform(k_w2, (N2, K2), jnp.float32, -bound2, bound2)
    b2 = jax.random.uniform(k_b2, (N2,), jnp.float32, -bound2, bound2)
    out2 = jax.block_until_ready(lwnn_layer(x2, w2, b2))
    ref2 = jnp.maximum(x2 @ w2.T + b2, 0.0)
    assert out2.shape == (M2, N2)
    assert jnp.allclose(out2, ref2, atol=1e-4, rtol=1e-4), "ragged-shape mismatch"

    print("KERNEL_OK")
</pallas_src>

<mosaic_0001>
module attributes {stable_mosaic.version = 11 : i64} {
  func.func @lwnn_kernel(%arg0: i32, %arg1: i32, %arg2: i32, %arg3: memref<16x128xf32, #tpu.memory_space<vmem>>, %arg4: memref<128x128xf32, #tpu.memory_space<vmem>>, %arg5: memref<1x128xf32, #tpu.memory_space<vmem>>, %arg6: memref<16x128xf32, #tpu.memory_space<vmem>>, %arg7: memref<16x128xf32, #tpu.memory_space<vmem>>) attributes {dimension_semantics = [#tpu.dimension_semantics<parallel>, #tpu.dimension_semantics<parallel>, #tpu.dimension_semantics<arbitrary>], iteration_bounds = array<i64: 1, 1, 1>, scalar_prefetch = 0 : i64, scratch_operands = 1 : i64, tpu.core_type = #tpu.core_type<tc>, window_params = [{transform_indices = @transform_0, window_bounds = array<i64: 16, 128>}, {transform_indices = @transform_1, window_bounds = array<i64: 128, 128>}, {transform_indices = @transform_2, window_bounds = array<i64: 1, 128>}, {transform_indices = @transform_3, window_bounds = array<i64: 16, 128>}]} {
    %c0_i32 = arith.constant 0 : i32
    %0 = arith.cmpi eq, %arg2, %c0_i32 : i32
    %1 = arith.extui %0 : i1 to i32
    %c0_i32_0 = arith.constant 0 : i32
    %2 = arith.cmpi ne, %1, %c0_i32_0 : i32
    scf.if %2 {
      %cst_10 = arith.constant 0.000000e+00 : f32
      %12 = vector.broadcast %cst_10 : f32 to vector<16x128xf32>
      %c0_11 = arith.constant 0 : index
      %c0_12 = arith.constant 0 : index
      %13 = vector.load %arg7[%c0_11, %c0_12] : memref<16x128xf32, #tpu.memory_space<vmem>>, vector<16x128xf32>
      tpu.vector_store %arg7[%c0_11, %c0_12], %12 {strides = array<i32>} : memref<16x128xf32, #tpu.memory_space<vmem>>, vector<16x128xf32>,
    } else {
    }
    %c0 = arith.constant 0 : index
    %c0_1 = arith.constant 0 : index
    %3 = vector.load %arg7[%c0, %c0_1] : memref<16x128xf32, #tpu.memory_space<vmem>>, vector<16x128xf32>
    %c0_2 = arith.constant 0 : index
    %c0_3 = arith.constant 0 : index
    %4 = vector.load %arg3[%c0_2, %c0_3] : memref<16x128xf32, #tpu.memory_space<vmem>>, vector<16x128xf32>
    %c0_4 = arith.constant 0 : index
    %c0_5 = arith.constant 0 : index
    %5 = vector.load %arg4[%c0_4, %c0_5] : memref<128x128xf32, #tpu.memory_space<vmem>>, vector<128x128xf32>
    %cst = arith.constant dense<0.000000e+00> : vector<16x128xf32>
    %6 = tpu.matmul %4, %5, %cst {dimension_numbers = #tpu.dot_dimension_numbers<[1], [1], [0], [0], [0, 0, 1, 0], [], []>} : vector<16x128xf32>, vector<128x128xf32>, vector<16x128xf32> -> vector<16x128xf32>
    %7 = arith.addf %3, %6 : vector<16x128xf32>
    %c0_6 = arith.constant 0 : index
    %c0_7 = arith.constant 0 : index
    %8 = vector.load %arg7[%c0_6, %c0_7] : memref<16x128xf32, #tpu.memory_space<vmem>>, vector<16x128xf32>
    tpu.vector_store %arg7[%c0_6, %c0_7], %7 {strides = array<i32>} : memref<16x128xf32, #tpu.memory_space<vmem>>, vector<16x128xf32>,
    %c0_i32_8 = arith.constant 0 : i32
    %9 = arith.cmpi eq, %arg2, %c0_i32_8 : i32
    %10 = arith.extui %9 : i1 to i32
    %c0_i32_9 = arith.constant 0 : i32
    %11 = arith.cmpi ne, %10, %c0_i32_9 : i32
    scf.if %11 {
      %c0_10 = arith.constant 0 : index
      %c0_11 = arith.constant 0 : index
      %12 = vector.load %arg7[%c0_10, %c0_11] : memref<16x128xf32, #tpu.memory_space<vmem>>, vector<16x128xf32>
      %c0_12 = arith.constant 0 : index
      %c0_13 = arith.constant 0 : index
      %13 = vector.load %arg5[%c0_12, %c0_13] : memref<1x128xf32, #tpu.memory_space<vmem>>, vector<1x128xf32>
      %14 = vector.broadcast %13 : vector<1x128xf32> to vector<16x128xf32>
      %15 = arith.addf %12, %14 : vector<16x128xf32>
      %cst_14 = arith.constant 0.000000e+00 : f32
      %16 = vector.broadcast %cst_14 : f32 to vector<16x128xf32>
      %17 = arith.maximumf %15, %16 : vector<16x128xf32>
      %c0_15 = arith.constant 0 : index
      %c0_16 = arith.constant 0 : index
      %18 = vector.load %arg6[%c0_15, %c0_16] : memref<16x128xf32, #tpu.memory_space<vmem>>, vector<16x128xf32>
      tpu.vector_store %arg6[%c0_15, %c0_16], %17 {strides = array<i32>} : memref<16x128xf32, #tpu.memory_space<vmem>>, vector<16x128xf32>,
    } else {
    }
    return
  }
  func.func @transform_0(%arg0: i32, %arg1: i32, %arg2: i32) -> (i32, i32) {
    %c0_i32 = arith.constant 0 : i32
    return %arg0, %arg2 : i32, i32
  }
  func.func @transform_1(%arg0: i32, %arg1: i32, %arg2: i32) -> (i32, i32) {
    %c0_i32 = arith.constant 0 : i32
    return %arg1, %arg2 : i32, i32
  }
  func.func @transform_2(%arg0: i32, %arg1: i32, %arg2: i32) -> (i32, i32) {
    %c0_i32 = arith.constant 0 : i32
    %c0_i32_0 = arith.constant 0 : i32
    return %c0_i32, %arg1 : i32, i32
  }
  func.func @transform_3(%arg0: i32, %arg1: i32, %arg2: i32) -> (i32, i32) {
    %c0_i32 = arith.constant 0 : i32
    return %arg0, %arg1 : i32, i32
  }
}

</mosaic_0001>

<bundles_post_ra>
// kernel: tpu_custom_call.1
= control target key start
LH: loop header
LB: loop body
LE: loop exit
PB: predicated region body
PF: predicated region fallthrough
CT: control target
= control target key end

     0   :  { %8 = vsyncpa [#allocation4], 0  ;;  %s355_s0 = inlined_call_operand.hbm [shape: f32[16,128], index: 0, kind: input, shape index: {}]   ;;  %s356_s1 = inlined_call_operand.hbm [shape: f32[128,128], index: 1, kind: input, shape index: {}]   ;;  %s357_s2 = inlined_call_operand.vmem [shape: f32[1,128], index: 2, kind: input, shape index: {}]   ;;  %s358_s3 = inlined_call_operand.hbm [shape: f32[16,128], index: 3, kind: output, shape index: {}]  }
   0x1   :  { %9 = vsyncpa [#allocation7], 0 }
   0x2   :  { %10 = vsyncpa [#allocation5], 0  ;;  %s309_s12 = smov [#allocation3]  }
   0x3   :  { %s16_s13 = sshll.u32 %s309_s12, 4  ;;  %s17_s13 = int_to_ptr.vmem [resolvable:$true] %s16_s13 }
   0x4   :  { %s251_s14 = scalar_lea.vmem %s17_s13, 256  ;;  %p256_p1 = scmp.lt.s32.totalorder %s17_s13, %s17_s13 }
   0x5   :  { %p252_p0 = scmp.ne.s32.totalorder %s17_s13, %s251_s14  ;;  %p257_p2 = scmp.lt.s32.totalorder %s251_s14, %s251_s14 }
   0x7   :  { %p258_p3 = por %p257_p2, %p256_p1 }
   0x9   :  { %p259_p4 = pnand %p258_p3, %p252_p0 }
   0xb   :  { %262 = shalt.err (!%p259_p4)
}
   0xc   :  { %s310_s15 = smov 128   ;;  %s311_s16 = smov 8  }
   0xd   :  { %22 = dma.hbm_to_vmem [thread:$0]  %s355_s0, 256, %s17_s13, [#allocation4], %s310_s15, %s310_s15, %s311_s16  }
   0xe   :  { %s312_s19 = smov [#allocation6]  }
   0xf   :  { %s28_s20 = sshll.u32 %s312_s19, 4  ;;  %s29_s20 = int_to_ptr.vmem [resolvable:$true] %s28_s20 }
  0x10   :  { %s271_s21 = scalar_lea.vmem %s29_s20, 2048  ;;  %p276_p6 = scmp.lt.s32.totalorder %s29_s20, %s29_s20 }
  0x11   :  { %p272_p5 = scmp.ne.s32.totalorder %s29_s20, %s271_s21  ;;  %p277_p7 = scmp.lt.s32.totalorder %s271_s21, %s271_s21 }
  0x13   :  { %p278_p8 = por %p277_p7, %p276_p6 }
  0x15   :  { %p279_p9 = pnand %p278_p8, %p272_p5 }
  0x17   :  { %282 = shalt.err (!%p279_p9)
}
  0x18   :  { %34 = dma.hbm_to_vmem [thread:$0]  %s356_s1, 2048, %s29_s20, [#allocation7], %s310_s15, %s310_s15, %s311_s16  }
  0x19   :  { %303 = dma.done.wait [#allocation4], 256  }
  0x1a   :  { %304 = vsyncadd [#allocation4], 4294967040 }
  0x1b   :  { %305 = dma.done.wait [#allocation7], 2048  }
  0x1c   :  { %306 = vsyncadd [#allocation7], 4294965248  ;;  %v68_v0 = vld [vmem:[#allocation6 + $0x78] sm:$0xff]  ;;  %v67_v1 = vld [vmem:[#allocation6 + $0x70] sm:$0xff]  ;;  %s313_s24 = smov [#allocation8]  }
  0x1d   :  { %203 = vmatprep.subr.mxu0 %v68_v0  ;;  %v66_v2 = vld [vmem:[#allocation6 + $0x68] sm:$0xff]  ;;  %v51_v3 = vld [vmem:[#allocation3] sm:$0xff]  ;;  %v65_v4 = vld [vmem:[#allocation6 + $0x60] sm:$0xff]  ;;  %s171_s25 = sshll.u32 %s313_s24, 4  ;;  %s172_s25 = int_to_ptr.vmem [resolvable:$true] %s171_s25 }
  0x1e   :  { %204 = vmatpush3.xpose.msra.mxu0 %v68_v0  ;;  %235 = vmatprep.mubr.f32.mxu0 %v51_v3  ;;  %v64_v5 = vld [vmem:[#allocation6 + $0x58] sm:$0xff]  ;;  %v63_v6 = vld [vmem:[#allocation6 + $0x50] sm:$0xff]  ;;  %v62_v7 = vld [vmem:[#allocation6 + $0x48] sm:$0xff]  ;;  %s283_s26 = scalar_lea.vmem %s172_s25, 256  ;;  %p288_p11 = scmp.lt.s32.totalorder %s172_s25, %s172_s25 }
  0x1f   :  { %205 = vmatprep.subr.mxu0 %v67_v1  ;;  %v61_v8 = vld [vmem:[#allocation6 + $0x40] sm:$0xff]  ;;  %v60_v9 = vld [vmem:[#allocation6 + $0x38] sm:$0xff]  ;;  %v59_v10 = vld [vmem:[#allocation6 + $0x30] sm:$0xff]  ;;  %p284_p10 = scmp.ne.s32.totalorder %s172_s25, %s283_s26  ;;  %p289_p12 = scmp.lt.s32.totalorder %s283_s26, %s283_s26 }
  0x20   :  { %v58_v11 = vld [vmem:[#allocation6 + $0x28] sm:$0xff]  ;;  %v57_v12 = vld [vmem:[#allocation6 + $0x20] sm:$0xff]  ;;  %v56_v13 = vld [vmem:[#allocation6 + $0x18] sm:$0xff] }
  0x21   :  { %v55_v14 = vld [vmem:[#allocation6 + $0x10] sm:$0xff]  ;;  %v54_v15 = vld [vmem:[#allocation6 + $0x8] sm:$0xff]  ;;  %v53_v16 = vld [vmem:[#allocation6] sm:$0xff]  ;;  %p290_p13 = por %p289_p12, %p288_p11 }
  0x22   :  { %206 = vmatpush3.xpose.msra.mxu0 %v67_v1  ;;  %v52_v17 = vld [vmem:[#allocation3 + $0x8] sm:$0xff]  ;;  %v184_v18 = vld [vmem:[%s357_s2] ss:$0 sm:$0xff] }
  0x23   :  { %207 = vmatprep.subr.mxu0 %v66_v2  ;;  %p291_p0 = pnand %p290_p13, %p284_p10 }
  0x26   :  { %208 = vmatpush3.xpose.msra.mxu0 %v66_v2 }
  0x27   :  { %209 = vmatprep.subr.mxu0 %v65_v4 }
  0x2a   :  { %210 = vmatpush3.xpose.msra.mxu0 %v65_v4 }
  0x2b   :  { %211 = vmatprep.subr.mxu0 %v64_v5 }
  0x2e   :  { %212 = vmatpush3.xpose.msra.mxu0 %v64_v5 }
  0x2f   :  { %213 = vmatprep.subr.mxu0 %v63_v6 }
  0x32   :  { %214 = vmatpush3.xpose.msra.mxu0 %v63_v6 }
  0x33   :  { %215 = vmatprep.subr.mxu0 %v62_v7 }
  0x36   :  { %216 = vmatpush3.xpose.msra.mxu0 %v62_v7 }
  0x37   :  { %217 = vmatprep.subr.mxu0 %v61_v8 }
  0x3a   :  { %218 = vmatpush3.xpose.msra.mxu0 %v61_v8 }
  0x3b   :  { %219 = vmatprep.subr.mxu0 %v60_v9 }
  0x3e   :  { %220 = vmatpush3.xpose.msra.mxu0 %v60_v9 }
  0x3f   :  { %221 = vmatprep.subr.mxu0 %v59_v10 }
  0x42   :  { %222 = vmatpush3.xpose.msra.mxu0 %v59_v10 }
  0x43   :  { %223 = vmatprep.subr.mxu0 %v58_v11 }
  0x46   :  { %224 = vmatpush3.xpose.msra.mxu0 %v58_v11 }
  0x47   :  { %225 = vmatprep.subr.mxu0 %v57_v12 }
  0x4a   :  { %226 = vmatpush3.xpose.msra.mxu0 %v57_v12 }
  0x4b   :  { %227 = vmatprep.subr.mxu0 %v56_v13 }
  0x4e   :  { %228 = vmatpush3.xpose.msra.mxu0 %v56_v13 }
  0x4f   :  { %229 = vmatprep.subr.mxu0 %v55_v14 }
  0x52   :  { %230 = vmatpush3.xpose.msra.mxu0 %v55_v14 }
  0x53   :  { %231 = vmatprep.subr.mxu0 %v54_v15 }
  0x56   :  { %232 = vmatpush3.xpose.msra.mxu0 %v54_v15 }
  0x57   :  { %233 = vmatprep.subr.mxu0 %v53_v16 }
  0x5a   :  { %234 = vmatpush3.xpose.msra.mxu0 %v53_v16 }
  0x5d   :  { %236 = vmatmul.mubr.f32.vlgmr.msra.gmra.mxu0 %v52_v17 }
 0x11d   :  { %v237_v19 = vpop.f32.mrf.mxu0 }
 0x11e   :  { %v161_v20 = vadd.f32 %v237_v19, %v184_v18 }
 0x11f   :  { %v135_v21 = vpop.f32.mrf.mxu0 }
 0x120   :  { %v163_v22 = vmax.f32 %v161_v20, 0.0  ;;  %v160_v23 = vadd.f32 %v184_v18, %v135_v21 }
 0x122   :  { %165 = vst [vmem:[#allocation8 + $0x8] sm:$0xff] %v163_v22  ;;  %v162_v24 = vmax.f32 %v160_v23, 0.0 }
 0x124   :  { %164 = vst [vmem:[#allocation8] sm:$0xff] %v162_v24 }
 0x125   :  { %294 = shalt.err (!%p291_p0)
}
 0x126   :  { %177 = dma.vmem_to_hbm [thread:$0]  %s172_s25, 256, %s358_s3, [#allocation5], %s310_s15, %s310_s15, %s311_s16  }
 0x127   :  { %307 = dma.done.wait [#allocation5], 256  }
 0x128   :  { %308 = vsyncadd [#allocation5], 4294967040 }
 0x129   :  { %181 = vsyncpa [#allocation4], 1 }
 0x12a   :  { %182 = vsyncpa [#allocation7], 1 }
 0x12b   :  { %183 = vsyncpa [#allocation5], 1 }

</bundles_post_ra>
